<compile_context>
chip_gen: v7x
topology: tpu7x:2x2x1
jax: 0.10.0
libtpu: 0.0.40
codegen_flags: <defaults>
</compile_context>

<pallas_src>
import functools
import math

import jax
import jax.numpy as jnp
from jax.experimental import pallas as pl
from jax.experimental.pallas import tpu as pltpu


# -----------------------------------------------------------------------------
# Pallas kernel: full attention forward for one batch sample (all refs 2-D)
# -----------------------------------------------------------------------------
def _attention_kernel(q_ref, k_ref, v_ref, wq_ref, wk_ref, wv_ref,
                      out_ref, attn_ref, *, scale):
    # q_ref  : (Lq, D)      k_ref, v_ref : (Lk, D)
    # wq_ref : (D, P)       wk_ref : (D, P)        wv_ref : (D, D)
    # out_ref: (Lq, D)      attn_ref : (Lq, Lk)
    q = q_ref[...]
    k = k_ref[...]
    v = v_ref[...]

    # q/k projections on the MXU with f32 accumulation.  Fold the 1/sqrt(P)
    # softmax scale into the small (Lq, P) tensor instead of the (Lq, Lk)
    # score matrix (Lk/P fewer VPU multiplies).
    qp = jnp.dot(q, wq_ref[...], preferred_element_type=jnp.float32) * scale
    kp = jnp.dot(k, wk_ref[...], preferred_element_type=jnp.float32)

    # Scores: contract the P dim of both operands (qp @ kp^T) directly on the
    # MXU via dot_general dimension numbers -- no materialized transpose.
    u = jax.lax.dot_general(qp, kp, (((1,), (1,)), ((), ())),
                            preferred_element_type=jnp.float32)     # (Lq, Lk)

    # Numerically stable softmax in f32; the reciprocal runs on the EUP slot.
    u = u - jnp.max(u, axis=-1, keepdims=True)
    e = jnp.exp(u)
    denom = jnp.sum(e, axis=-1, keepdims=True)
    attn = e * pl.reciprocal(denom, approx=True)
    attn_ref[...] = attn.astype(attn_ref.dtype)

    # Attention-weighted values + output projection (vmlp).
    o = jnp.dot(attn.astype(v.dtype), v, preferred_element_type=jnp.float32)
    o = jnp.dot(o.astype(wv_ref.dtype), wv_ref[...],
                preferred_element_type=jnp.float32)
    out_ref[...] = o.astype(out_ref.dtype)


def attention_forward(q, k, v, wq, wk, wv):
    """JAX/Pallas equivalent of Attention.forward().

    q           : (Lq, N, D)                 k, v : (Lk, N, D)
    wq, wk      : (D, 32)   transposed nn.Linear weights (y = x @ w, no bias)
    wv          : (D, D)
    returns     : (output (Lq, N, D), attn_map (N, Lq, Lk))
    """
    lq, n, d = q.shape
    lk = k.shape[0]
    p = wq.shape[1]
    dtype = q.dtype
    scale = 1.0 / math.sqrt(p)

    # Each batch sample is addressed as a lane-aligned (L, D) block of the
    # free (L, N, D) -> (L, N*D) view, so D must be a lane-block multiple
    # (CLIP ctx_dim is always a multiple of 128).
    # TODO(synk): add a padded / transposed fallback for ctx_dim % 128 != 0.
    assert d % 128 == 0 or n == 1, (
        f"attention_forward requires ctx_dim to be a multiple of 128 (got {d}) "
        "so each batch sample maps to a lane-aligned block.")

    # Free, layout-preserving reshapes (row-major merge of trailing dims):
    # no HBM traffic, unlike the old wrapper-side transposes.
    q2 = q.reshape(lq, n * d)
    k2 = k.reshape(lk, n * d)
    v2 = v.reshape(lk, n * d)

    kernel = functools.partial(_attention_kernel, scale=scale)

    out2, attn = pl.pallas_call(
        kernel,
        out_shape=(
            jax.ShapeDtypeStruct((lq, n * d), dtype),   # output, (Lq, N*D) view
            jax.ShapeDtypeStruct((n, lq, lk), dtype),   # attention map
        ),
        grid=(n,),
        in_specs=[
            pl.BlockSpec((lq, d), lambda b: (0, b)),            # q, sample b
            pl.BlockSpec((lk, d), lambda b: (0, b)),            # k, sample b
            pl.BlockSpec((lk, d), lambda b: (0, b)),            # v, sample b
            pl.BlockSpec((d, p), lambda b: (0, 0)),             # wq (pinned)
            pl.BlockSpec((d, p), lambda b: (0, 0)),             # wk (pinned)
            pl.BlockSpec((d, d), lambda b: (0, 0)),             # wv (pinned)
        ],
        out_specs=(
            pl.BlockSpec((lq, d), lambda b: (0, b)),            # output, sample b
            pl.BlockSpec((None, lq, lk), lambda b: (b, 0, 0)),  # attn, sample b
        ),
        compiler_params=pltpu.CompilerParams(
            dimension_semantics=("parallel",),
            # Explicit scoped-VMEM budget: plenty for the double-buffered
            # per-sample blocks + pinned weights at CLIP-sized shapes, and
            # safely below v7x's 64 MiB physical VMEM (128 MiB on v5e/v6e).
            vmem_limit_bytes=48 * 1024 * 1024,
        ),
    )(q2, k2, v2, wq, wk, wv)

    # Free reshape back to the module's (Lq, N, D) output layout.
    return out2.reshape(lq, n, d), attn


# -----------------------------------------------------------------------------
# Pure-JAX reference (mirrors the PyTorch forward exactly)
# -----------------------------------------------------------------------------
def attention_ref(q, k, v, wq, wk, wv):
    qb = jnp.transpose(q, (1, 0, 2))
    kb = jnp.transpose(k, (1, 0, 2))
    vb = jnp.transpose(v, (1, 0, 2))
    qp = qb @ wq
    kp = kb @ wk
    u = jnp.einsum("bqp,bkp->bqk", qp, kp) / math.sqrt(wq.shape[1])
    attn = jax.nn.softmax(u, axis=-1)
    out = jnp.einsum("bqk,bkd->bqd", attn, vb) @ wv
    return jnp.transpose(out, (1, 0, 2)), attn


if __name__ == "__main__":
    # Small shapes: seq=8 tokens, batch=2, ctx_dim=128 (lane-dense), proj=32.
    lq = lk = 8
    n = 2
    d = 128
    p = 32          # hard-coded 32-dim q/k projection in the module
    dtype = jnp.float32

    key = jax.random.PRNGKey(0)
    kq, kk, kv, kwq, kwk, kwv = jax.random.split(key, 6)

    q = jax.random.normal(kq, (lq, n, d), dtype)
    k = jax.random.normal(kk, (lk, n, d), dtype)
    v = jax.random.normal(kv, (lk, n, d), dtype)
    # nn.Linear(bias=False) weights, stored transposed so y = x @ w.
    wq = jax.random.normal(kwq, (d, p), dtype) / math.sqrt(d)
    wk = jax.random.normal(kwk, (d, p), dtype) / math.sqrt(d)
    wv = jax.random.normal(kwv, (d, d), dtype) / math.sqrt(d)

    fwd = jax.jit(attention_forward)
    out, attn = fwd(q, k, v, wq, wk, wv)
    out, attn = jax.block_until_ready((out, attn))

    ref_out, ref_attn = attention_ref(q, k, v, wq, wk, wv)

    assert out.shape == (lq, n, d)
    assert attn.shape == (n, lq, lk)
    # Tolerance covers MXU f32 pass-count differences and the approximate
    # (EUP) reciprocal used for the softmax denominator.
    assert jnp.allclose(out, ref_out, rtol=2e-2, atol=2e-2), \
        float(jnp.max(jnp.abs(out - ref_out)))
    assert jnp.allclose(attn, ref_attn, rtol=2e-2, atol=2e-2), \
        float(jnp.max(jnp.abs(attn - ref_attn)))

    print("KERNEL_OK")
</pallas_src>

<mosaic_0001>
module attributes {stable_mosaic.version = 11 : i64} {
  func.func @_attention_kernel(%arg0: i32, %arg1: memref<8x128xf32, #tpu.memory_space<vmem>>, %arg2: memref<8x128xf32, #tpu.memory_space<vmem>>, %arg3: memref<8x128xf32, #tpu.memory_space<vmem>>, %arg4: memref<128x32xf32, #tpu.memory_space<vmem>>, %arg5: memref<128x32xf32, #tpu.memory_space<vmem>>, %arg6: memref<128x128xf32, #tpu.memory_space<vmem>>, %arg7: memref<8x128xf32, #tpu.memory_space<vmem>>, %arg8: memref<1x8x8xf32, #tpu.memory_space<vmem>>) attributes {dimension_semantics = [#tpu.dimension_semantics<parallel>], iteration_bounds = array<i64: 2>, scalar_prefetch = 0 : i64, scratch_operands = 0 : i64, tpu.core_type = #tpu.core_type<tc>, window_params = [{transform_indices = @transform_0, window_bounds = array<i64: 8, 128>}, {transform_indices = @transform_1, window_bounds = array<i64: 8, 128>}, {transform_indices = @transform_2, window_bounds = array<i64: 8, 128>}, {pipeline_mode = #tpu.pipeline_mode<synchronous>, transform_indices = @transform_3, window_bounds = array<i64: 128, 32>}, {pipeline_mode = #tpu.pipeline_mode<synchronous>, transform_indices = @transform_4, window_bounds = array<i64: 128, 32>}, {pipeline_mode = #tpu.pipeline_mode<synchronous>, transform_indices = @transform_5, window_bounds = array<i64: 128, 128>}, {transform_indices = @transform_6, window_bounds = array<i64: 8, 128>}, {transform_indices = @transform_7, window_bounds = array<i64: 1, 8, 8>}]} {
    %c0 = arith.constant 0 : index
    %c0_0 = arith.constant 0 : index
    %0 = vector.load %arg1[%c0, %c0_0] : memref<8x128xf32, #tpu.memory_space<vmem>>, vector<8x128xf32>
    %c0_1 = arith.constant 0 : index
    %c0_2 = arith.constant 0 : index
    %1 = vector.load %arg2[%c0_1, %c0_2] : memref<8x128xf32, #tpu.memory_space<vmem>>, vector<8x128xf32>
    %c0_3 = arith.constant 0 : index
    %c0_4 = arith.constant 0 : index
    %2 = vector.load %arg3[%c0_3, %c0_4] : memref<8x128xf32, #tpu.memory_space<vmem>>, vector<8x128xf32>
    %c0_5 = arith.constant 0 : index
    %c0_6 = arith.constant 0 : index
    %3 = vector.load %arg4[%c0_5, %c0_6] : memref<128x32xf32, #tpu.memory_space<vmem>>, vector<128x32xf32>
    %cst = arith.constant dense<0.000000e+00> : vector<8x32xf32>
    %4 = tpu.matmul %0, %3, %cst {dimension_numbers = #tpu.dot_dimension_numbers<[1], [0], [0], [1], [0, 0, 1, 1], [], []>} : vector<8x128xf32>, vector<128x32xf32>, vector<8x32xf32> -> vector<8x32xf32>
    %cst_7 = arith.constant 0.176776692 : f32
    %5 = vector.broadcast %cst_7 : f32 to vector<8x32xf32>
    %6 = arith.mulf %4, %5 : vector<8x32xf32>
    %c0_8 = arith.constant 0 : index
    %c0_9 = arith.constant 0 : index
    %7 = vector.load %arg5[%c0_8, %c0_9] : memref<128x32xf32, #tpu.memory_space<vmem>>, vector<128x32xf32>
    %cst_10 = arith.constant dense<0.000000e+00> : vector<8x32xf32>
    %8 = tpu.matmul %1, %7, %cst_10 {dimension_numbers = #tpu.dot_dimension_numbers<[1], [0], [0], [1], [0, 0, 1, 1], [], []>} : vector<8x128xf32>, vector<128x32xf32>, vector<8x32xf32> -> vector<8x32xf32>
    %cst_11 = arith.constant dense<0.000000e+00> : vector<8x8xf32>
    %9 = tpu.matmul %6, %8, %cst_11 {dimension_numbers = #tpu.dot_dimension_numbers<[1], [1], [0], [0], [0, 0, 1, 0], [], []>} : vector<8x32xf32>, vector<8x32xf32>, vector<8x8xf32> -> vector<8x8xf32>
    %cst_12 = arith.constant dense<0xFF800000> : vector<8xf32>
    %10 = vector.multi_reduction <maximumf>, %9, %cst_12 [1] : vector<8x8xf32> to vector<8xf32>
    %11 = vector.shape_cast %10 : vector<8xf32> to vector<8x1xf32>
    %12 = vector.broadcast %11 : vector<8x1xf32> to vector<8x8xf32>
    %13 = arith.subf %9, %12 : vector<8x8xf32>
    %14 = math.exp %13 : vector<8x8xf32>
    %cst_13 = arith.constant dense<0.000000e+00> : vector<8xf32>
    %15 = vector.multi_reduction <add>, %14, %cst_13 [1] : vector<8x8xf32> to vector<8xf32>
    %16 = vector.shape_cast %15 : vector<8xf32> to vector<8x1xf32>
    %17 = tpu.reciprocal %16 {approx = true} : vector<8x1xf32> -> vector<8x1xf32>
    %18 = vector.broadcast %17 : vector<8x1xf32> to vector<8x8xf32>
    %19 = arith.mulf %14, %18 : vector<8x8xf32>
    %c0_14 = arith.constant 0 : index
    %c0_15 = arith.constant 0 : index
    %c0_16 = arith.constant 0 : index
    %20 = vector.load %arg8[%c0_14, %c0_15, %c0_16] : memref<1x8x8xf32, #tpu.memory_space<vmem>>, vector<1x8x8xf32>
    %21 = vector.shape_cast %20 : vector<1x8x8xf32> to vector<8x8xf32>
    %22 = vector.shape_cast %19 : vector<8x8xf32> to vector<1x8x8xf32>
    tpu.vector_store %arg8[%c0_14, %c0_15, %c0_16], %22 {strides = array<i32>} : memref<1x8x8xf32, #tpu.memory_space<vmem>>, vector<1x8x8xf32>,
    %cst_17 = arith.constant dense<0.000000e+00> : vector<8x128xf32>
    %23 = tpu.matmul %19, %2, %cst_17 {dimension_numbers = #tpu.dot_dimension_numbers<[1], [0], [0], [1], [0, 0, 1, 1], [], []>} : vector<8x8xf32>, vector<8x128xf32>, vector<8x128xf32> -> vector<8x128xf32>
    %c0_18 = arith.constant 0 : index
    %c0_19 = arith.constant 0 : index
    %24 = vector.load %arg6[%c0_18, %c0_19] : memref<128x128xf32, #tpu.memory_space<vmem>>, vector<128x128xf32>
    %cst_20 = arith.constant dense<0.000000e+00> : vector<8x128xf32>
    %25 = tpu.matmul %23, %24, %cst_20 {dimension_numbers = #tpu.dot_dimension_numbers<[1], [0], [0], [1], [0, 0, 1, 1], [], []>} : vector<8x128xf32>, vector<128x128xf32>, vector<8x128xf32> -> vector<8x128xf32>
    %c0_21 = arith.constant 0 : index
    %c0_22 = arith.constant 0 : index
    %26 = vector.load %arg7[%c0_21, %c0_22] : memref<8x128xf32, #tpu.memory_space<vmem>>, vector<8x128xf32>
    tpu.vector_store %arg7[%c0_21, %c0_22], %25 {strides = array<i32>} : memref<8x128xf32, #tpu.memory_space<vmem>>, vector<8x128xf32>,
    return
  }
  func.func @transform_0(%arg0: i32) -> (i32, i32) {
    %c0_i32 = arith.constant 0 : i32
    %c0_i32_0 = arith.constant 0 : i32
    return %c0_i32, %arg0 : i32, i32
  }
  func.func @transform_1(%arg0: i32) -> (i32, i32) {
    %c0_i32 = arith.constant 0 : i32
    %c0_i32_0 = arith.constant 0 : i32
    return %c0_i32, %arg0 : i32, i32
  }
  func.func @transform_2(%arg0: i32) -> (i32, i32) {
    %c0_i32 = arith.constant 0 : i32
    %c0_i32_0 = arith.constant 0 : i32
    return %c0_i32, %arg0 : i32, i32
  }
  func.func @transform_3(%arg0: i32) -> (i32, i32) {
    %c0_i32 = arith.constant 0 : i32
    %c0_i32_0 = arith.constant 0 : i32
    %c0_i32_1 = arith.constant 0 : i32
    return %c0_i32, %c0_i32_0 : i32, i32
  }
  func.func @transform_4(%arg0: i32) -> (i32, i32) {
    %c0_i32 = arith.constant 0 : i32
    %c0_i32_0 = arith.constant 0 : i32
    %c0_i32_1 = arith.constant 0 : i32
    return %c0_i32, %c0_i32_0 : i32, i32
  }
  func.func @transform_5(%arg0: i32) -> (i32, i32) {
    %c0_i32 = arith.constant 0 : i32
    %c0_i32_0 = arith.constant 0 : i32
    %c0_i32_1 = arith.constant 0 : i32
    return %c0_i32, %c0_i32_0 : i32, i32
  }
  func.func @transform_6(%arg0: i32) -> (i32, i32) {
    %c0_i32 = arith.constant 0 : i32
    %c0_i32_0 = arith.constant 0 : i32
    return %c0_i32, %arg0 : i32, i32
  }
  func.func @transform_7(%arg0: i32) -> (i32, i32, i32) {
    %c0_i32 = arith.constant 0 : i32
    %c0_i32_0 = arith.constant 0 : i32
    %c0_i32_1 = arith.constant 0 : i32
    return %arg0, %c0_i32, %c0_i32_0 : i32, i32, i32
  }
}

</mosaic_0001>

<bundles_post_ra>
// kernel: attention_forward.1
= control target key start
LH: loop header
LB: loop body
LE: loop exit
PB: predicated region body
PF: predicated region fallthrough
CT: control target
= control target key end

     0   :  { %13 = vsyncpa [#allocation3], 0  ;;  %s1578_s0 = inlined_call_operand.vmem [shape: f32[8,256], index: 0, kind: input, shape index: {}]   ;;  %s1579_s1 = inlined_call_operand.vmem [shape: f32[8,256], index: 1, kind: input, shape index: {}]   ;;  %s1580_s2 = inlined_call_operand.vmem [shape: f32[8,256], index: 2, kind: input, shape index: {}]   ;;  %s1581_s3 = inlined_call_operand.vmem [shape: f32[128,32], index: 3, kind: input, shape index: {}]   ;;  %s1582_s4 = inlined_call_operand.vmem [shape: f32[128,32], index: 4, kind: input, shape index: {}]   ;;  %s1583_s5 = inlined_call_operand.vmem [shape: f32[128,128], index: 5, kind: input, shape index: {}]   ;;  %s1584_s6 = inlined_call_operand.vmem [shape: f32[8,256], index: 6, kind: output, shape index: {0}]   ;;  %s1585_s7 = inlined_call_operand.hbm [shape: f32[2,8,8], index: 7, kind: output, shape index: {1}]  }
   0x1   :  { %15 = vsyncpa [#allocation3 + $0x1], 0  ;;  %s1285_s24 = smov 0   ;;  %s1287_s25 = smov 0  }
   0x2   :  { %s1289_s26 = smov 0   ;;  %s1291_s27 = smov 0  }
   0x3 LB: > { %s1306_s28 = sadd.s32 4294967295, %s1239_s27   ;;  %s873_s29 = sadd.s32 4294967294, %s1239_s27   ;;  %s1239_s27 = sphi %s1291_s27, %s1591_s27   ;;  %s1235_s26 = sphi %s1289_s26, %s1590_s26   ;;  %s1231_s25 = sphi %s1287_s25, %s1589_s25   ;;  %s1227_s24 = sphi %s1285_s24, %s1588_s24  }
   0x4   : > { %s1310_s30 = sadd.s32 1, %s1239_s27   ;;  %s195_s8 = sadd.s32 1, %s1235_s26 }
   0x5   : > { %s192_s9 = ssub.s32 %s1239_s27, %s1310_s30  ;;  %p205_p0 = scmp.ne.s32.totalorder %s1235_s26, %s1231_s25 }
   0x6   : > { %p193_p1 = scmp.eq.s32.totalorder %s192_s9, 0  ;;  %p206_p2 = scmp.eq.s32.totalorder %s1306_s28, 1 }
   0x7   : > { %p211_p3 = scmp.ne.s32.totalorder %s1231_s25, %s1227_s24  ;;  %p212_p4 = scmp.eq.s32.totalorder %s873_s29, 1 }
   0x8   : > { %s1321_s10 = scalar_select %p193_p1, %s1235_s26, %s195_s8  }
   0x9   : > { %p1323_p5 = por %p206_p2, %p205_p0  ;;  %p1327_p6 = por %p212_p4, %p211_p3 }
   0xa   : > { %p876_p7 = scmp.ge.s32.totalorder %s1239_s27, 1  ;;  %p260_p8 = scmp.lt.s32.totalorder %s1239_s27, 3 }
   0xc   : > { %p261_p9 = pnand %p876_p7, %p260_p8 }
   0xd   : > { %v409_v0 = vld [vmem:[%s1582_s4] sm:$0xff] (!%p261_p9)  ;;  %v410_v1 = vld [vmem:[%s1582_s4 + $0x8] sm:$0xff] (!%p261_p9)  ;;  %v1241_v3 = vmov (!%p261_p9), 0.0|0.0   ;;  %v411_v6 = vld [vmem:[%s1582_s4 + $0x10] sm:$0xff] (!%p261_p9)  ;;  %vm1242_vm0 = vmmov (!%p261_p9), 0   ;;  %v1243_v11 = vmov (!%p261_p9), 0.0  }
   0xe   : > { %264 = sbr.rel (%p261_p9) target bundleno = 1213 (0x4bd), region = 44  ;;  %v322_v2 = vld [vmem:[%s1581_s3] sm:$0xff] (!%p261_p9)  ;;  %1083 = vmatprep.subr.bf16.mxu1 (!%p261_p9), %v1241_v3  ;;  %1059 = vmatprep.subr.bf16.mxu0 (!%p261_p9), %v1241_v3  ;;  %v1084_v4 = vpack.c.bf16 (!%p261_p9), %v410_v1, %v409_v0  ;;  %v323_v5 = vld [vmem:[%s1581_s3 + $0x8] sm:$0xff] (!%p261_p9)  ;;  %v412_v7 = vld [vmem:[%s1582_s4 + $0x18] sm:$0xff] (!%p261_p9)  ;;  %p303_p10 = scmp.lt.s32.totalorder (!%p261_p9), %s1306_s28, 1  ;;  %vm495_vm1 = vcmask (!%p261_p9), 261120  }
   0xf   : > { %v1060_v8 = vpack.c.bf16 (!%p261_p9), %v323_v5, %v322_v2  ;;  %v324_v9 = vld [vmem:[%s1581_s3 + $0x10] sm:$0xff] (!%p261_p9)  ;;  %v325_v10 = vld [vmem:[%s1581_s3 + $0x18] sm:$0xff] (!%p261_p9)  ;;  %1011 = vmatprep.mubr.msk.f32.mxu1 (!%p261_p9), %vm1242_vm0, %v1243_v11  ;;  %976 = vmatprep.mubr.msk.f32.mxu0 (!%p261_p9), %vm1242_vm0, %v1243_v11  ;;  %v1087_v12 = vpack.c.bf16 (!%p261_p9), %v412_v7, %v411_v6  ;;  %v413_v14 = vld [vmem:[%s1582_s4 + $0x20] sm:$0xff] (!%p261_p9)  ;;  %vm572_vm2 = vcmask (!%p261_p9), 64512   ;;  %s1244_s21 = smov (!%p261_p9), [#allocation2]  }
  0x10   : > { %1085 = vmatpush3.bf16.msra.mxu1 (!%p261_p9), %v1084_v4  ;;  %v1063_v13 = vpack.c.bf16 (!%p261_p9), %v325_v10, %v324_v9  ;;  %v414_v15 = vld [vmem:[%s1582_s4 + $0x28] sm:$0xff] (!%p261_p9)  ;;  %v326_v16 = vld [vmem:[%s1581_s3 + $0x20] sm:$0xff] (!%p261_p9)  ;;  %v415_v20 = vld [vmem:[%s1582_s4 + $0x30] sm:$0xff] (!%p261_p9)  ;;  %s1181_s23 = sshll.u32 (!%p261_p9), %s1244_s21, 4  ;;  %s1182_s23 = int_to_ptr.vmem [resolvable:$false] %s1181_s23 }
  0x11   : > { %1061 = vmatpush3.bf16.msra.mxu0 (!%p261_p9), %v1060_v8  ;;  %1086 = vmatprep.subr.bf16.mxu1 (!%p261_p9), %v1241_v3  ;;  %v327_v17 = vld [vmem:[%s1581_s3 + $0x28] sm:$0xff] (!%p261_p9)  ;;  %v1090_v18 = vpack.c.bf16 (!%p261_p9), %v414_v15, %v413_v14  ;;  %v416_v21 = vld [vmem:[%s1582_s4 + $0x38] sm:$0xff] (!%p261_p9)  ;;  %v328_v22 = vld [vmem:[%s1581_s3 + $0x30] sm:$0xff] (!%p261_p9)  ;;  %s1183_s29 = scalar_lea.vmem (!%p261_p9), %s1182_s23, 256 }
  0x12   : > { %1062 = vmatprep.subr.bf16.mxu0 (!%p261_p9), %v1241_v3  ;;  %v1066_v19 = vpack.c.bf16 (!%p261_p9), %v327_v17, %v326_v16  ;;  %v329_v23 = vld [vmem:[%s1581_s3 + $0x38] sm:$0xff] (!%p261_p9)  ;;  %v1093_v24 = vpack.c.bf16 (!%p261_p9), %v416_v21, %v415_v20  ;;  %v417_v26 = vld [vmem:[%s1582_s4 + $0x40] sm:$0xff] (!%p261_p9)  ;;  %v418_v27 = vld [vmem:[%s1582_s4 + $0x48] sm:$0xff] (!%p261_p9) }
  0x13   : > { %v1069_v25 = vpack.c.bf16 (!%p261_p9), %v329_v23, %v328_v22  ;;  %v330_v28 = vld [vmem:[%s1581_s3 + $0x40] sm:$0xff] (!%p261_p9)  ;;  %v331_v29 = vld [vmem:[%s1581_s3 + $0x48] sm:$0xff] (!%p261_p9)  ;;  %v1096_v30 = vpack.c.bf16 (!%p261_p9), %v418_v27, %v417_v26  ;;  %v419_v32 = vld [vmem:[%s1582_s4 + $0x50] sm:$0xff] (!%p261_p9) }
  0x14   : > { %1088 = vmatpush3.bf16.msra.mxu1 (!%p261_p9), %v1087_v12  ;;  %v1072_v31 = vpack.c.bf16 (!%p261_p9), %v331_v29, %v330_v28  ;;  %v420_v33 = vld [vmem:[%s1582_s4 + $0x58] sm:$0xff] (!%p261_p9)  ;;  %v332_v34 = vld [vmem:[%s1581_s3 + $0x50] sm:$0xff] (!%p261_p9)  ;;  %v421_v38 = vld [vmem:[%s1582_s4 + $0x60] sm:$0xff] (!%p261_p9) }
  0x15   : > { %1064 = vmatpush3.bf16.msra.mxu0 %v1063_v13  ;;  %1089 = vmatprep.subr.bf16.mxu1 %v1241_v3  ;;  %v333_v35 = vld [vmem:[%s1581_s3 + $0x58] sm:$0xff]  ;;  %v1099_v36 = vpack.c.bf16 %v420_v33, %v419_v32  ;;  %v422_v39 = vld [vmem:[%s1582_s4 + $0x68] sm:$0xff]  ;;  %v334_v40 = vld [vmem:[%s1581_s3 + $0x60] sm:$0xff]  ;;  %s304_s13 = scalar_select %p303_p10, %s1306_s28, 1 }
  0x16   : > { %1065 = vmatprep.subr.bf16.mxu0 %v1241_v3  ;;  %v1075_v37 = vpack.c.bf16 %v333_v35, %v332_v34  ;;  %v335_v41 = vld [vmem:[%s1581_s3 + $0x68] sm:$0xff]  ;;  %v1102_v42 = vpack.c.bf16 %v422_v39, %v421_v38  ;;  %v423_v44 = vld [vmem:[%s1582_s4 + $0x70] sm:$0xff]  ;;  %v424_v45 = vld [vmem:[%s1582_s4 + $0x78] sm:$0xff] }
  0x17   : > { %v1078_v43 = vpack.c.bf16 %v335_v41, %v334_v40  ;;  %v336_v46 = vld [vmem:[%s1581_s3 + $0x70] sm:$0xff]  ;;  %v337_v47 = vld [vmem:[%s1581_s3 + $0x78] sm:$0xff]  ;;  %s1449_s22 = sshll.u32 %s304_s13, 3  ;;  %v1105_v48 = vpack.c.bf16 %v424_v45, %v423_v44  ;;  %v658_v2 = vld [vmem:[%s1583_s5] sm:$0xff] }
  0x18   : > { %1091 = vmatpush3.bf16.msra.mxu1 %v1090_v18  ;;  %v1081_v49 = vpack.c.bf16 %v337_v47, %v336_v46  ;;  %s310_s8 = scalar_lea.vmem %s1579_s1, %s1449_s22  ;;  %s306_s15 = scalar_lea.vmem %s1578_s0, %s1449_s22  ;;  %v659_v4 = vld [vmem:[%s1583_s5 + $0x8] sm:$0xff]  ;;  %v660_v5 = vld [vmem:[%s1583_s5 + $0x10] sm:$0xff]  ;;  %v661_v7 = vld [vmem:[%s1583_s5 + $0x18] sm:$0xff] }
  0x19   : > { %1067 = vmatpush3.bf16.msra.mxu0 %v1066_v19  ;;  %1092 = vmatprep.subr.bf16.mxu1 %v1241_v3  ;;  %v320_v50 = vld [vmem:[%s310_s8] sm:$0xff]  ;;  %s314_s17 = scalar_lea.vmem %s1580_s2, %s1449_s22  ;;  %v1108_v6 = vpack.c.bf16 %v659_v4, %v658_v2  ;;  %v1111_v8 = vpack.c.bf16 %v661_v7, %v660_v5  ;;  %v663_v10 = vld [vmem:[%s1583_s5 + $0x28] sm:$0xff]  ;;  %v664_v12 = vld [vmem:[%s1583_s5 + $0x30] sm:$0xff]  ;;  %s300_s8 = sand.u32 1, %s1231_s25  }
  0x1a   : > { %1068 = vmatprep.subr.bf16.mxu0 %v1241_v3  ;;  %v319_v51 = vld [vmem:[%s306_s15] sm:$0xff]  ;;  %v665_v13 = vld [vmem:[%s1583_s5 + $0x38] sm:$0xff]  ;;  %v667_v16 = vld [vmem:[%s1583_s5 + $0x48] sm:$0xff]  ;;  %s877_s9 = sshll.u32 %s300_s8, 3  ;;  %s886_s15 = sshll.u32 %s1306_s28, 7 }
  0x1b   : > { %v321_v1 = vld [vmem:[%s314_s17] sm:$0xff]  ;;  %v1117_v14 = vpack.c.bf16 %v665_v13, %v664_v12  ;;  %v668_v18 = vld [vmem:[%s1583_s5 + $0x50] sm:$0xff]  ;;  %v669_v19 = vld [vmem:[%s1583_s5 + $0x58] sm:$0xff]  ;;  %s302_s14 = scalar_lea.vmem [#allocation2], %s877_s9  ;;  %s1538_s18 = scalar_lea.hbm %s1585_s7, %s886_s15 }
  0x1c   : > { %1094 = vmatpush3.bf16.msra.mxu1 %v1093_v24  ;;  %v662_v9 = vld [vmem:[%s1583_s5 + $0x20] sm:$0xff]  ;;  %v1123_v20 = vpack.c.bf16 %v669_v19, %v668_v18  ;;  %v671_v22 = vld [vmem:[%s1583_s5 + $0x68] sm:$0xff]  ;;  %v672_v24 = vld [vmem:[%s1583_s5 + $0x70] sm:$0xff]  ;;  %s766_s13 = sshll.u32 %s302_s14, 4  ;;  %s750_s19 = scalar_lea.sflag [#allocation3], %s300_s8  ;;  %s767_s13 = int_to_ptr.vmem [resolvable:$true] %s766_s13 }
  0x1d   : > { %1070 = vmatpush3.bf16.msra.mxu0 %v1069_v25  ;;  %1095 = vmatprep.subr.bf16.mxu1 %v1241_v3  ;;  %v666_v15 = vld [vmem:[%s1583_s5 + $0x40] sm:$0xff]  ;;  %v673_v25 = vld [vmem:[%s1583_s5 + $0x78] sm:$0xff]  ;;  %s1177_s20 = scalar_lea.vmem %s767_s13, 128  ;;  %p1184_p0 = scmp.lt.s32.totalorder %s767_s13, %s1182_s23 }
  0x1e   : > { %1071 = vmatprep.subr.bf16.mxu0 %v1241_v3  ;;  %v1120_v17 = vpack.c.bf16 %v667_v16, %v666_v15  ;;  %v670_v21 = vld [vmem:[%s1583_s5 + $0x60] sm:$0xff]  ;;  %v1129_v26 = vpack.c.bf16 %v673_v25, %v672_v24  ;;  %p1178_p11 = scmp.ne.s32.totalorder %s767_s13, %s1177_s20  ;;  %p1185_p1 = scmp.lt.s32.totalorder %s1183_s29, %s1177_s20 }
  0x1f   : > { %v1126_v23 = vpack.c.bf16 %v671_v22, %v670_v21 }
  0x20   : > { %1097 = vmatpush3.bf16.msra.mxu1 %v1096_v30  ;;  %p1179_p12 = pnand %p1178_p11, %p1323_p5  ;;  %p1186_p2 = por %p1185_p1, %p1184_p0 }
  0x21   : > { %1073 = vmatpush3.bf16.msra.mxu0 %v1072_v31  ;;  %1098 = vmatprep.subr.bf16.mxu1 %v1241_v3 }
  0x22   : > { %1074 = vmatprep.subr.bf16.mxu0 %v1241_v3  ;;  %p1180_p13 = pneg %p1179_p12 }
  0x24   : > { %1100 = vmatpush3.bf16.msra.mxu1 %v1099_v36  ;;  %p1187_p3 = pnand %p1186_p2, %p1180_p13 }
  0x25   : > { %1076 = vmatpush3.bf16.msra.mxu0 %v1075_v37  ;;  %1101 = vmatprep.subr.bf16.mxu1 %v1241_v3 }
  0x26   : > { %1077 = vmatprep.subr.bf16.mxu0 %v1241_v3 }
  0x28   : > { %1103 = vmatpush3.bf16.msra.mxu1 %v1102_v42 }
  0x29   : > { %1079 = vmatpush3.bf16.msra.mxu0 %v1078_v43  ;;  %1104 = vmatprep.subr.bf16.mxu1 %v1241_v3 }
  0x2a   : > { %1080 = vmatprep.subr.bf16.mxu0 %v1241_v3 }
  0x2c   : > { %1106 = vmatpush3.bf16.msra.mxu1 %v1105_v48 }
  0x2d   : > { %1082 = vmatpush3.bf16.msra.mxu0 %v1081_v49  ;;  %1014 = vmatprep.subr.mxu1 %v1243_v11 }
  0x2e   : > { %1107 = vmatprep.subr.bf16.mxu0 %v1241_v3 }
  0x2f   : > { %1012 = vmatmul.mubr.f32.vlgmr.msra.gmra.mrb[0].mxu1 %v320_v50 }
  0x30   : > { %977 = vmatmul.mubr.f32.vlgmr.msra.gmra.mrb[0].mxu0 %v319_v51  ;;  %1016 = vmatprep.mubr.msk.f32.mxu1 %vm1242_vm0, %v1243_v11 }
  0x31   : > { %1056 = vmatprep.mubr.msk.f32.mxu0 %vm1242_vm0, %v1243_v11  ;;  %1109 = vmatpush3.bf16.msra.mxu0 %v1108_v6 }
  0x32   : > { %1110 = vmatprep.subr.bf16.mxu0 %v1241_v3 }
  0x35   : > { %1112 = vmatpush3.bf16.msra.mxu0 %v1111_v8 }
  0x36   : > { %1113 = vmatprep.subr.bf16.mxu0 %v1241_v3 }
 0x102   : > { %v491_v52 = vpop.f32.mrb[0].mxu1 }
 0x103   : > { %v404_v53 = vpop.f32.mrb[0].mxu0  ;;  %v1013_v54 = vpop.f32.mrb[1].mxu1  ;;  %1015 = vmatpush3.xpose.msk.msra.mxu1 %vm495_vm1, %v491_v52 }
 0x104   : > { %v408_v55 = vmul.f32 0.17677669, %v404_v53  ;;  %v978_v56 = vpop.f32.mrb[1].mxu0  ;;  %1019 = vmatprep.subr.mxu1 %v1243_v11 }
 0x106   : > { %1017 = vmatmul.mubr.msk.f32.vlgmr.msra.gmra.mrb[2].mxu1 %vm495_vm1, %v408_v55 }
 0x107   : > { %1021 = vmatprep.mubr.msk.f32.mxu1 %vm1242_vm0, %v1243_v11  ;;  %1020 = vmatpush3.msra.mxu1 %v321_v1  ;;  %v1114_v11 = vpack.c.bf16 %v663_v10, %v662_v9 }
 0x109   : > { %1115 = vmatpush3.bf16.msra.mxu0 %v1114_v11 }
 0x10a   : > { %1116 = vmatprep.subr.bf16.mxu0 %v1241_v3 }
 0x10d   : > { %1118 = vmatpush3.bf16.msra.mxu0 %v1117_v14 }
 0x10e   : > { %1119 = vmatprep.subr.bf16.mxu0 %v1241_v3 }
 0x111   : > { %1121 = vmatpush3.bf16.msra.mxu0 %v1120_v17 }
 0x112   : > { %1122 = vmatprep.subr.bf16.mxu0 %v1241_v3 }
 0x115   : > { %1124 = vmatpush3.bf16.msra.mxu0 %v1123_v20 }
 0x116   : > { %1125 = vmatprep.subr.bf16.mxu0 %v1241_v3 }
 0x119   : > { %1127 = vmatpush3.bf16.msra.mxu0 %v1126_v23 }
 0x11a   : > { %1128 = vmatprep.subr.bf16.mxu0 %v1241_v3 }
 0x11d   : > { %1130 = vmatpush3.bf16.msra.mxu0 %v1129_v26 }
 0x1d9   : > { %v568_v57 = vpop.f32.mrb[2].mxu1 }
 0x1da   : > { %v1018_v58 = vpop.f32.mrb[3].mxu1  ;;  %v573_v59 = vsel %vm572_vm2, %v568_v57, -inf }
 0x1db   : > { %574 = vmax.xlane.f32.xlu0 %v573_v59 }
 0x268   : > { %v575_v60 = vpop.xlane.xlu0 %574 }
 0x269   : > { %v576_v61 = vsub.f32 %v568_v57, %v575_v60 }
 0x26b   : > { %v577_v62 = vmul.f32 1.442695, %v576_v61 }
 0x26d   : > { %1173 = vpow2.f32 %v577_v62 }
 0x277   : > { %v1174_v63 = vpop.eup %1173 }
 0x278   : > { %v579_v0 = vsel %vm572_vm2, %v1174_v63, 0.0 }
 0x279   : > { %580 = vadd.xlane.f32.xlu0 %v579_v0 }
 0x306   : > { %v581_v27 = vpop.xlane.xlu0 %580 }
 0x307   : > { %1175 = vrcp.f32 %v581_v27 }
 0x311   : > { %v1176_v28 = vpop.eup %1175 }
 0x312   : > { %v583_v29 = vmul.f32 %v1176_v28, %v1174_v63 }
 0x314   : > { %1022 = vmatmul.mubr.msk.f32.vlgmr.msra.gmra.mrb[4].mxu1 %vm572_vm2, %v583_v29  ;;  %584 = vst.msk [vmem:[%s302_s14] sm:$0xff] %vm572_vm2, %v583_v29 }
 0x3e7   : > { %v654_v30 = vpop.f32.mrb[4].mxu1 }
 0x3e8   : > { %v1023_v31 = vpop.f32.mrb[5].mxu1  ;;  %1057 = vmatmul.mubr.f32.vlgmr.msra.gmra.mrb[2].mxu0 %v654_v30 }
 0x3e9   : > { %1190 = shalt.err (!%p1187_p3)
}
 0x3ea   : > { %s1191_s28 = scalar_lea.hbm %s1538_s18, 128  ;;  %s1195_s14 = scalar_lea.hbm %s1585_s7, 256 }
 0x3eb   : > { %p1192_p4 = scmp.ne.s32.totalorder %s1538_s18, %s1191_s28  ;;  %p1196_p9 = scmp.lt.u32.totalorder %s1538_s18, %s1585_s7 }
 0x3ec   : > { %p1197_p10 = scmp.lt.u32.totalorder %s1195_s14, %s1191_s28  ;;  %p1199_p12 = scmp.lt.u32.totalorder %s1191_s28, %s1538_s18 }
 0x3ed   : > { %p1193_p7 = pnand %p1192_p4, %p1323_p5 }
 0x3ee   : > { %p1198_p11 = por %p1197_p10, %p1196_p9 }
 0x3ef   : > { %p1194_p8 = pneg %p1193_p7 }
 0x3f0   : > { %p1200_p13 = por %p1199_p12, %p1198_p11 }
 0x3f2   : > { %p1201_p0 = pnand %p1200_p13, %p1194_p8 }
 0x3f4   : > { %1204 = shalt.err (!%p1201_p0)
}
 0x3f5   : > { %1131 = dma.vmem_to_hbm [thread:$0]  (%p1323_p5), %s767_s13, 128, %s1538_s18, %s750_s19  }
 0x3f6   : > { %s318_s21 = scalar_lea.vmem %s1584_s6, %s1449_s22 }
 0x4bb   : > { %v740_v3 = vpop.f32.mrb[2].mxu0 }
 0x4bc   : > { %744 = vst [vmem:[%s318_s21] sm:$0xff] %v740_v3  ;;  %v1058_v32 = vpop.f32.mrb[3].mxu0 }
 0x4bd PF: > { %p1137_p1 = scmp.ge.s32.totalorder %s1239_s27, 2  ;;  %s785_s23 = sand.u32 1, %s1227_s24  }
 0x4be   : > { %s786_s29 = scalar_lea.sflag [#allocation3], %s785_s23 }
 0x4bf   : > { %p1134_p2 = pnand %p1137_p1, %p1327_p6 }
 0x4c1   : > { %1222 = dma.done.wait (!%p1134_p2), %s786_s29, 128  }
 0x4c2   : > { %1224 = vsyncadd (!%p1134_p2), %s786_s29, 4294967168  ;;  %p18_p5 = scmp.ge.s32.totalorder %s1310_s30, 4   ;;  %s1588_s24 = smov %s1231_s25 }
 0x4c3   : > { %s1589_s25 = smov %s1235_s26  ;;  %s1590_s26 = smov %s1321_s10 }
 0x4c4   : > { %s1591_s27 = smov %s1310_s30  ;;  %20 = sbr.rel (!%p18_p5) target bundleno = 3 (0x3), region = 97 }
 0x4cb   :  { %791 = vsyncpa [#allocation3], 1 }
 0x4cc   :  { %793 = vsyncpa [#allocation3 + $0x1], 1 }

</bundles_post_ra>
